<compile_context>
chip_gen: v5e
topology: v5e:2x2
jax: 0.10.0
libtpu: 0.0.40
codegen_flags: <defaults>
</compile_context>

<pallas_src>
import math

import jax
import jax.numpy as jnp
from jax import lax
from jax.experimental import pallas as pl
from jax.experimental.pallas import tpu as pltpu

NUM_HEADS = 2          # MultiHeadAttentionFusion(num_heads=2)
NUM_RES_BLOCKS = 3     # Predictor(num_layers=4) -> 3 residual blocks
OUT_DIM = 4            # predictor_syn output_size=4 (task='PV')
LN_EPS = 1e-5
BN_EPS = 1e-5
LANE = 128
NSEG = 2 * NUM_HEADS   # 2 fusion directions x 2 heads


# --------------------------------------------------------------------------
# Host-side parameter packing
# --------------------------------------------------------------------------
def _pad_to(n, m):
    return ((n + m - 1) // m) * m


def _pad_cols(a, w):
    pad = w - a.shape[-1]
    if pad > 0:
        a = jnp.concatenate([a, jnp.zeros(a.shape[:-1] + (pad,), a.dtype)], axis=-1)
    return a


def _pad_rows(a, h):
    pad = h - a.shape[0]
    if pad > 0:
        a = jnp.concatenate([a, jnp.zeros((pad,) + a.shape[1:], a.dtype)], axis=0)
    return a


def _pack_last_axis(named, lane=LANE):
    """Concatenate arrays along the last axis at lane-aligned (128) offsets."""
    pieces, offsets, cur = [], {}, 0
    for name, arr in named:
        w = _pad_to(arr.shape[-1], lane)
        offsets[name] = cur
        pieces.append(_pad_cols(arr, w))
        cur += w
    return jnp.concatenate(pieces, axis=-1), offsets


def pack_params(params, in_dim, node_size, hidden_size):
    """Pack all parameters into one 128-row weight slab + one bias slab + seg masks."""
    D, Hh = node_size, hidden_size
    D2 = 2 * D
    dh = D // NUM_HEADS
    scale = 1.0 / math.sqrt(dh)
    bn_s = 1.0 / math.sqrt(1.0 + BN_EPS)          # eval-mode BN (mean=0, var=1)
    f32 = jnp.float32
    if 2 * in_dim > LANE or D2 > LANE or Hh > LANE:
        # TODO(synk): >128-lane feature dims would need multi-vreg column groups.
        raise NotImplementedError("pack_params assumes 2*in_dim, 2*node_size, hidden <= 128")

    z = jnp.zeros((D, D), f32)
    zin = jnp.zeros((in_dim, D), f32)

    # Shared encoder as block-diagonal so [g1 | g2] @ enc = [f1 | f2].
    enc_w = jnp.block([[params["enc_w"], zin], [zin, params["enc_w"]]])      # (2*in, 2D)
    enc_b = jnp.concatenate([params["enc_b"], params["enc_b"]], axis=-1)     # (1, 2D)

    # Q/K/V acting on [f1 | f2]; 1/sqrt(dh) folded into Q; lanes 0:D = direction 1
    # (Q1/K2/V2), lanes D:2D = direction 2 (Q2/K1/V1).
    wq = jnp.block([[params["q1_w"] * scale, z], [z, params["q2_w"] * scale]])
    wk = jnp.block([[z, params["k1_w"]], [params["k2_w"], z]])
    wv = jnp.block([[z, params["v1_w"]], [params["v2_w"], z]])
    bq = jnp.concatenate([params["q1_b"] * scale, params["q2_b"] * scale], -1)
    bk = jnp.concatenate([params["k2_b"], params["k1_b"]], -1)
    bv = jnp.concatenate([params["v2_b"], params["v1_b"]], -1)

    # Head-swap permutation folded host-side -> extra K_sw / V_sw column groups.
    l = jnp.arange(D2)
    perm = (l // D) * D + ((l % D) + dh) % D
    groups = [(wq, bq), (wk, bk), (wk[:, perm], bk[:, perm]),
              (wv, bv), (wv[:, perm], bv[:, perm])]

    # Fuse the shared encoder into every projection (Linear∘Linear is Linear):
    #   p = gcat @ (enc_w @ W) + (enc_b @ W + b)
    qkv_w = jnp.concatenate([_pad_cols(enc_w @ w, LANE) for w, _ in groups], -1)
    qkv_b = jnp.concatenate([_pad_cols(enc_b @ w + b, LANE) for w, b in groups], -1)

    # Fuse attention output projection with the predictor input layer
    # (eval-mode dropout is identity; no nonlinearity in between).
    oppin_w = params["op_w"] @ params["pin_w"]                    # (2D, Hh)
    oppin_b = params["op_b"] @ params["pin_w"] + params["pin_b"]  # (1, Hh)

    # Single 128-row weight slab; every activation is carried lane-dense (128
    # lanes, zero padded) so all column groups start/end on vreg boundaries.
    w_named = [("qkv", _pad_rows(qkv_w, LANE)), ("oppin", _pad_rows(oppin_w, LANE))]
    for i in range(NUM_RES_BLOCKS):
        w_named.append((f"hl{i}", _pad_rows(params[f"hl{i}_w"], LANE)))
    w_named.append(("pout", _pad_rows(params["pout_w"], LANE)))
    wslab, w_off = _pack_last_axis(w_named)

    # One (1, N) slab for every bias + fused LayerNorm/BatchNorm affine.
    # Zero padding keeps the unused lanes of every activation at exactly 0.
    vec_named = [("qkv_b", qkv_b), ("oppin_b", oppin_b)]
    for i in range(NUM_RES_BLOCKS):
        g_f = params[f"ln{i}_g"] * params["bn_g"] * bn_s
        b_f = params[f"ln{i}_b"] * params["bn_g"] * bn_s + params["bn_b"]
        vec_named += [(f"hl{i}_b", params[f"hl{i}_b"]),
                      (f"aff{i}_g", g_f), (f"aff{i}_b", b_f)]
    vec_named.append(("pout_b", params["pout_b"]))
    vec, vec_off = _pack_last_axis(vec_named)

    # Head-segment indicator matrices, precomputed host-side.
    lanes = jnp.arange(LANE)
    seg = (((lanes[:, None] // dh) == jnp.arange(NSEG)[None, :]) &
           (lanes[:, None] < D2)).astype(f32)                     # (128, NSEG)
    seg_t = seg.T                                                 # (NSEG, 128)

    packed = dict(w=wslab, vec=vec, seg=seg, seg_t=seg_t)
    meta = dict(hidden=Hh, w_off=w_off, vec_off=vec_off)
    return packed, meta


# --------------------------------------------------------------------------
# Pallas kernel
# --------------------------------------------------------------------------
def _make_kernel(meta):
    Hh = meta["hidden"]
    NQKV = 5 * LANE
    wo, vo = meta["w_off"], meta["vec_off"]
    inv_h = 1.0 / float(Hh)

    def kernel(x_ref, w_ref, vec_ref, seg_ref, segt_ref, out_ref):
        f32 = jnp.float32

        def wcol(name, width=LANE):
            o = wo[name]
            return w_ref[:, o:o + width]

        def vcol(name, width=LANE):
            o = vo[name]
            return vec_ref[:, o:o + width]

        seg = seg_ref[...]            # (128, 4)
        segt = segt_ref[...]          # (4, 128)

        # ---- fused encoder + all Q/K/V projections: one MXU dot ----
        p = jnp.dot(x_ref[...], wcol("qkv", NQKV),
                    preferred_element_type=f32) + vcol("qkv_b", NQKV)
        q = p[:, 0 * LANE:1 * LANE]     # [Q1 | Q2]          (1/sqrt(dh) pre-folded)
        k = p[:, 1 * LANE:2 * LANE]     # [K2 | K1]
        ksw = p[:, 2 * LANE:3 * LANE]   # head-swapped keys  (swap pre-folded)
        v = p[:, 3 * LANE:4 * LANE]     # [V2 | V1]
        vsw = p[:, 4 * LANE:5 * LANE]   # head-swapped values

        # ---- lane-dense 2-head cross attention (both directions at once) ----
        s0 = jnp.dot(q * k, seg, preferred_element_type=f32)     # same-head key score
        s1 = jnp.dot(q * ksw, seg, preferred_element_type=f32)   # other-head key score
        # 2-way softmax == logistic of the score gap: one EUP exp + one EUP
        # approx reciprocal instead of max / 2x exp / 2x divide.
        p0 = pl.reciprocal(1.0 + jnp.exp(s1 - s0), approx=True)
        p1 = 1.0 - p0
        w0 = jnp.dot(p0, segt, preferred_element_type=f32)       # (TB, 128)
        w1 = jnp.dot(p1, segt, preferred_element_type=f32)
        fused = w0 * v + w1 * vsw       # [fused_f1 | fused_f2 | 0-pad]

        # ---- fused output_proj -> predictor input (eval dropout = identity) ----
        xh = jax.nn.relu(jnp.dot(fused, wcol("oppin"),
                                 preferred_element_type=f32) + vcol("oppin_b"))

        # ---- residual blocks: Linear + LayerNorm (+ folded BN affine) + ReLU + skip
        for i in range(NUM_RES_BLOCKS):
            y = jnp.dot(xh, wcol(f"hl{i}"),
                        preferred_element_type=f32) + vcol(f"hl{i}_b")
            # E[y^2] - mu^2: the two cross-lane reductions are independent.
            mu = jnp.sum(y, axis=-1, keepdims=True) * inv_h
            ms = jnp.sum(y * y, axis=-1, keepdims=True) * inv_h
            yn = (y - mu) * lax.rsqrt(ms - mu * mu + LN_EPS)
            yn = yn * vcol(f"aff{i}_g") + vcol(f"aff{i}_b")      # pad lanes stay 0
            xh = jax.nn.relu(yn) + xh

        # ---- lane-dense output against the 128-lane padded pout slab ----
        out = jnp.dot(xh, wcol("pout"), preferred_element_type=f32) + vcol("pout_b")
        out_ref[...] = out.astype(out_ref.dtype)

    return kernel


def _pick_batch_tile(B, batch_tile):
    tb = min(B, batch_tile)
    if B >= 16:
        # Keep >=2 grid steps so the "parallel" batch axis can be sharded across
        # both TensorCores on v7x; keep tiles sublane (8) aligned.
        tb = min(tb, _pad_to(pl.cdiv(B, 2), 8))
        tb = _pad_to(tb, 8)
    return max(tb, 1)


def panda_st_forward(g1, g2, packed, meta, *, batch_tile=512):
    """Full Panda_ST (task='PV') forward in one pallas_call, gridded over batch."""
    B = g1.shape[0]
    gcat = jnp.concatenate([g1, g2], axis=-1).astype(jnp.float32)
    if gcat.shape[1] < LANE:                       # lane-dense input DMA
        gcat = jnp.concatenate(
            [gcat, jnp.zeros((B, LANE - gcat.shape[1]), jnp.float32)], axis=-1)

    TB = _pick_batch_tile(B, batch_tile)
    grid = (pl.cdiv(B, TB),)
    const = lambda i: (0, 0)                       # params stay VMEM-resident

    out = pl.pallas_call(
        _make_kernel(meta),
        out_shape=jax.ShapeDtypeStruct((B, LANE), jnp.float32),   # lane-dense output
        grid=grid,
        in_specs=[
            pl.BlockSpec((TB, LANE), lambda i: (i, 0)),
            pl.BlockSpec(packed["w"].shape, const),
            pl.BlockSpec(packed["vec"].shape, const),
            pl.BlockSpec(packed["seg"].shape, const),
            pl.BlockSpec(packed["seg_t"].shape, const),
        ],
        out_specs=pl.BlockSpec((TB, LANE), lambda i: (i, 0)),
        compiler_params=pltpu.CompilerParams(dimension_semantics=("parallel",)),
    )(gcat, packed["w"], packed["vec"], packed["seg"], packed["seg_t"])
    # Slice the real 4 output columns + .squeeze() outside the kernel.
    return jnp.squeeze(out[:, :OUT_DIM])


# --------------------------------------------------------------------------
# Plain-JAX reference (mirrors the PyTorch module, eval mode) + init
# --------------------------------------------------------------------------
def reference_forward(g1, g2, params):
    def lin(x, name):
        return jnp.dot(x, params[name + "_w"]) + params[name + "_b"]

    # TODO(synk): the encoder is an injected dependency in Panda_ST.__init__
    # (archit1 is archit2); modeled as a single shared Linear layer.
    f1 = lin(g1, "enc")
    f2 = lin(g2, "enc")
    D = params["enc_w"].shape[1]
    dh = D // NUM_HEADS

    def attn(q, k, v):
        B = q.shape[0]
        qh = q.reshape(B, NUM_HEADS, dh)
        kh = k.reshape(B, NUM_HEADS, dh)
        vh = v.reshape(B, NUM_HEADS, dh)
        scores = jnp.einsum("bhd,bkd->bhk", qh, kh) / math.sqrt(dh)
        w = jax.nn.softmax(scores, axis=-1)
        return jnp.einsum("bhk,bkd->bhd", w, vh).reshape(B, D)

    fused_f1 = attn(lin(f1, "q1"), lin(f2, "k2"), lin(f2, "v2"))
    fused_f2 = attn(lin(f2, "q2"), lin(f1, "k1"), lin(f1, "v1"))
    feats = lin(jnp.concatenate([fused_f1, fused_f2], axis=-1), "op")

    x = jax.nn.relu(lin(feats, "pin"))
    bn_scale = 1.0 / math.sqrt(1.0 + BN_EPS)   # BatchNorm1d eval, running stats (0,1)
    for i in range(NUM_RES_BLOCKS):
        residual = x
        y = lin(x, f"hl{i}")
        mu = jnp.mean(y, axis=-1, keepdims=True)
        var = jnp.mean(jnp.square(y - mu), axis=-1, keepdims=True)
        y = (y - mu) / jnp.sqrt(var + LN_EPS) * params[f"ln{i}_g"] + params[f"ln{i}_b"]
        y = y * bn_scale * params["bn_g"] + params["bn_b"]
        x = jax.nn.relu(y) + residual
    return jnp.squeeze(lin(x, "pout"))


def init_params(key, in_dim, node_size, hidden_size):
    D = node_size
    shapes = {"enc_w": (in_dim, D), "enc_b": (1, D)}
    for n in ["q1", "k2", "v2", "q2", "k1", "v1"]:
        shapes[f"{n}_w"] = (D, D)
        shapes[f"{n}_b"] = (1, D)
    shapes["op_w"] = (2 * D, 2 * D)
    shapes["op_b"] = (1, 2 * D)
    shapes["pin_w"] = (2 * D, hidden_size)
    shapes["pin_b"] = (1, hidden_size)
    for i in range(NUM_RES_BLOCKS):
        shapes[f"hl{i}_w"] = (hidden_size, hidden_size)
        shapes[f"hl{i}_b"] = (1, hidden_size)
        shapes[f"ln{i}_g"] = (1, hidden_size)
        shapes[f"ln{i}_b"] = (1, hidden_size)
    shapes["bn_g"] = (1, hidden_size)
    shapes["bn_b"] = (1, hidden_size)
    shapes["pout_w"] = (hidden_size, OUT_DIM)
    shapes["pout_b"] = (1, OUT_DIM)

    names = sorted(shapes)
    keys = jax.random.split(key, len(names))
    params = {}
    for name, k in zip(names, keys):
        if name.endswith("_g"):          # LN / BN gamma near 1
            params[name] = 1.0 + 0.1 * jax.random.normal(k, shapes[name], jnp.float32)
        else:
            params[name] = 0.1 * jax.random.normal(k, shapes[name], jnp.float32)
    return params


if __name__ == "__main__":
    B, IN_DIM, NODE_SIZE, HIDDEN_SIZE = 8, 16, 32, 32

    key = jax.random.PRNGKey(0)
    kp, kg1, kg2 = jax.random.split(key, 3)
    params = init_params(kp, IN_DIM, NODE_SIZE, HIDDEN_SIZE)
    g1 = jax.random.normal(kg1, (B, IN_DIM), dtype=jnp.float32)
    g2 = jax.random.normal(kg2, (B, IN_DIM), dtype=jnp.float32)

    packed, meta = pack_params(params, IN_DIM, NODE_SIZE, HIDDEN_SIZE)
    fwd = jax.jit(lambda a, b, p: panda_st_forward(a, b, p, meta))
    out = jax.block_until_ready(fwd(g1, g2, packed))

    ref = reference_forward(g1, g2, params)
    assert out.shape == (B, OUT_DIM), out.shape
    # Tolerance leaves headroom for the EUP approx-reciprocal in the 2-way softmax.
    if not jnp.allclose(out, ref, rtol=5e-3, atol=5e-3):
        max_err = float(jnp.max(jnp.abs(out - ref)))
        raise AssertionError(f"Pallas kernel mismatch vs reference, max abs err={max_err}")
    print("KERNEL_OK")
</pallas_src>

<mosaic_0001>
module attributes {stable_mosaic.version = 11 : i64} {
  func.func @kernel(%arg0: i32, %arg1: memref<8x128xf32, #tpu.memory_space<vmem>>, %arg2: memref<128x1280xf32, #tpu.memory_space<vmem>>, %arg3: memref<1x2048xf32, #tpu.memory_space<vmem>>, %arg4: memref<128x4xf32, #tpu.memory_space<vmem>>, %arg5: memref<4x128xf32, #tpu.memory_space<vmem>>, %arg6: memref<8x128xf32, #tpu.memory_space<vmem>>) attributes {dimension_semantics = [#tpu.dimension_semantics<parallel>], iteration_bounds = array<i64: 1>, scalar_prefetch = 0 : i64, scratch_operands = 0 : i64, tpu.core_type = #tpu.core_type<tc>, window_params = [{transform_indices = @transform_0, window_bounds = array<i64: 8, 128>}, {pipeline_mode = #tpu.pipeline_mode<synchronous>, transform_indices = @transform_1, window_bounds = array<i64: 128, 1280>}, {pipeline_mode = #tpu.pipeline_mode<synchronous>, transform_indices = @transform_2, window_bounds = array<i64: 1, 2048>}, {pipeline_mode = #tpu.pipeline_mode<synchronous>, transform_indices = @transform_3, window_bounds = array<i64: 128, 4>}, {pipeline_mode = #tpu.pipeline_mode<synchronous>, transform_indices = @transform_4, window_bounds = array<i64: 4, 128>}, {transform_indices = @transform_5, window_bounds = array<i64: 8, 128>}]} {
    %c0 = arith.constant 0 : index
    %c0_0 = arith.constant 0 : index
    %0 = vector.load %arg4[%c0, %c0_0] : memref<128x4xf32, #tpu.memory_space<vmem>>, vector<128x4xf32>
    %c0_1 = arith.constant 0 : index
    %c0_2 = arith.constant 0 : index
    %1 = vector.load %arg5[%c0_1, %c0_2] : memref<4x128xf32, #tpu.memory_space<vmem>>, vector<4x128xf32>
    %c0_3 = arith.constant 0 : index
    %c0_4 = arith.constant 0 : index
    %2 = vector.load %arg1[%c0_3, %c0_4] : memref<8x128xf32, #tpu.memory_space<vmem>>, vector<8x128xf32>
    %c0_5 = arith.constant 0 : index
    %c0_6 = arith.constant 0 : index
    %3 = vector.load %arg2[%c0_5, %c0_6] : memref<128x1280xf32, #tpu.memory_space<vmem>>, vector<128x640xf32>
    %cst = arith.constant dense<0.000000e+00> : vector<8x640xf32>
    %4 = tpu.matmul %2, %3, %cst {dimension_numbers = #tpu.dot_dimension_numbers<[1], [0], [0], [1], [0, 0, 1, 1], [], []>} : vector<8x128xf32>, vector<128x640xf32>, vector<8x640xf32> -> vector<8x640xf32>
    %c0_7 = arith.constant 0 : index
    %c0_8 = arith.constant 0 : index
    %5 = vector.load %arg3[%c0_7, %c0_8] : memref<1x2048xf32, #tpu.memory_space<vmem>>, vector<1x640xf32>
    %6 = vector.broadcast %5 : vector<1x640xf32> to vector<8x640xf32>
    %7 = arith.addf %4, %6 : vector<8x640xf32>
    %8 = vector.extract_strided_slice %7 {offsets = [0, 0], sizes = [8, 128], strides = [1, 1]} : vector<8x640xf32> to vector<8x128xf32>
    %9 = vector.extract_strided_slice %7 {offsets = [0, 128], sizes = [8, 128], strides = [1, 1]} : vector<8x640xf32> to vector<8x128xf32>
    %10 = vector.extract_strided_slice %7 {offsets = [0, 256], sizes = [8, 128], strides = [1, 1]} : vector<8x640xf32> to vector<8x128xf32>
    %11 = vector.extract_strided_slice %7 {offsets = [0, 384], sizes = [8, 128], strides = [1, 1]} : vector<8x640xf32> to vector<8x128xf32>
    %12 = vector.extract_strided_slice %7 {offsets = [0, 512], sizes = [8, 128], strides = [1, 1]} : vector<8x640xf32> to vector<8x128xf32>
    %13 = arith.mulf %8, %9 : vector<8x128xf32>
    %cst_9 = arith.constant dense<0.000000e+00> : vector<8x4xf32>
    %14 = tpu.matmul %13, %0, %cst_9 {dimension_numbers = #tpu.dot_dimension_numbers<[1], [0], [0], [1], [0, 0, 1, 1], [], []>} : vector<8x128xf32>, vector<128x4xf32>, vector<8x4xf32> -> vector<8x4xf32>
    %15 = arith.mulf %8, %10 : vector<8x128xf32>
    %cst_10 = arith.constant dense<0.000000e+00> : vector<8x4xf32>
    %16 = tpu.matmul %15, %0, %cst_10 {dimension_numbers = #tpu.dot_dimension_numbers<[1], [0], [0], [1], [0, 0, 1, 1], [], []>} : vector<8x128xf32>, vector<128x4xf32>, vector<8x4xf32> -> vector<8x4xf32>
    %17 = arith.subf %16, %14 : vector<8x4xf32>
    %18 = math.exp %17 : vector<8x4xf32>
    %cst_11 = arith.constant 1.000000e+00 : f32
    %19 = vector.broadcast %cst_11 : f32 to vector<8x4xf32>
    %20 = arith.addf %19, %18 : vector<8x4xf32>
    %21 = tpu.reciprocal %20 {approx = true} : vector<8x4xf32> -> vector<8x4xf32>
    %cst_12 = arith.constant 1.000000e+00 : f32
    %22 = vector.broadcast %cst_12 : f32 to vector<8x4xf32>
    %23 = arith.subf %22, %21 : vector<8x4xf32>
    %cst_13 = arith.constant dense<0.000000e+00> : vector<8x128xf32>
    %24 = tpu.matmul %21, %1, %cst_13 {dimension_numbers = #tpu.dot_dimension_numbers<[1], [0], [0], [1], [0, 0, 1, 1], [], []>} : vector<8x4xf32>, vector<4x128xf32>, vector<8x128xf32> -> vector<8x128xf32>
    %cst_14 = arith.constant dense<0.000000e+00> : vector<8x128xf32>
    %25 = tpu.matmul %23, %1, %cst_14 {dimension_numbers = #tpu.dot_dimension_numbers<[1], [0], [0], [1], [0, 0, 1, 1], [], []>} : vector<8x4xf32>, vector<4x128xf32>, vector<8x128xf32> -> vector<8x128xf32>
    %26 = arith.mulf %24, %11 : vector<8x128xf32>
    %27 = arith.mulf %25, %12 : vector<8x128xf32>
    %28 = arith.addf %26, %27 : vector<8x128xf32>
    %c0_15 = arith.constant 0 : index
    %c640 = arith.constant 640 : index
    %29 = vector.load %arg2[%c0_15, %c640] : memref<128x1280xf32, #tpu.memory_space<vmem>>, vector<128x128xf32>
    %cst_16 = arith.constant dense<0.000000e+00> : vector<8x128xf32>
    %30 = tpu.matmul %28, %29, %cst_16 {dimension_numbers = #tpu.dot_dimension_numbers<[1], [0], [0], [1], [0, 0, 1, 1], [], []>} : vector<8x128xf32>, vector<128x128xf32>, vector<8x128xf32> -> vector<8x128xf32>
    %c0_17 = arith.constant 0 : index
    %c640_18 = arith.constant 640 : index
    %31 = vector.load %arg3[%c0_17, %c640_18] : memref<1x2048xf32, #tpu.memory_space<vmem>>, vector<1x128xf32>
    %32 = vector.broadcast %31 : vector<1x128xf32> to vector<8x128xf32>
    %33 = arith.addf %30, %32 : vector<8x128xf32>
    %cst_19 = arith.constant 0.000000e+00 : f32
    %34 = vector.broadcast %cst_19 : f32 to vector<8x128xf32>
    %35 = arith.maximumf %33, %34 : vector<8x128xf32>
    %c0_20 = arith.constant 0 : index
    %c768 = arith.constant 768 : index
    %36 = vector.load %arg2[%c0_20, %c768] : memref<128x1280xf32, #tpu.memory_space<vmem>>, vector<128x128xf32>
    %cst_21 = arith.constant dense<0.000000e+00> : vector<8x128xf32>
    %37 = tpu.matmul %35, %36, %cst_21 {dimension_numbers = #tpu.dot_dimension_numbers<[1], [0], [0], [1], [0, 0, 1, 1], [], []>} : vector<8x128xf32>, vector<128x128xf32>, vector<8x128xf32> -> vector<8x128xf32>
    %c0_22 = arith.constant 0 : index
    %c768_23 = arith.constant 768 : index
    %38 = vector.load %arg3[%c0_22, %c768_23] : memref<1x2048xf32, #tpu.memory_space<vmem>>, vector<1x128xf32>
    %39 = vector.broadcast %38 : vector<1x128xf32> to vector<8x128xf32>
    %40 = arith.addf %37, %39 : vector<8x128xf32>
    %cst_24 = arith.constant dense<0.000000e+00> : vector<8xf32>
    %41 = vector.multi_reduction <add>, %40, %cst_24 [1] : vector<8x128xf32> to vector<8xf32>
    %42 = vector.shape_cast %41 : vector<8xf32> to vector<8x1xf32>
    %cst_25 = arith.constant 3.125000e-02 : f32
    %43 = vector.broadcast %cst_25 : f32 to vector<8x1xf32>
    %44 = arith.mulf %42, %43 : vector<8x1xf32>
    %45 = arith.mulf %40, %40 : vector<8x128xf32>
    %cst_26 = arith.constant dense<0.000000e+00> : vector<8xf32>
    %46 = vector.multi_reduction <add>, %45, %cst_26 [1] : vector<8x128xf32> to vector<8xf32>
    %47 = vector.shape_cast %46 : vector<8xf32> to vector<8x1xf32>
    %cst_27 = arith.constant 3.125000e-02 : f32
    %48 = vector.broadcast %cst_27 : f32 to vector<8x1xf32>
    %49 = arith.mulf %47, %48 : vector<8x1xf32>
    %50 = vector.broadcast %44 : vector<8x1xf32> to vector<8x128xf32>
    %51 = arith.subf %40, %50 : vector<8x128xf32>
    %52 = arith.mulf %44, %44 : vector<8x1xf32>
    %53 = arith.subf %49, %52 : vector<8x1xf32>
    %cst_28 = arith.constant 9.99999974E-6 : f32
    %54 = vector.broadcast %cst_28 : f32 to vector<8x1xf32>
    %55 = arith.addf %53, %54 : vector<8x1xf32>
    %56 = math.rsqrt %55 : vector<8x1xf32>
    %57 = vector.broadcast %56 : vector<8x1xf32> to vector<8x128xf32>
    %58 = arith.mulf %51, %57 : vector<8x128xf32>
    %c0_29 = arith.constant 0 : index
    %c896 = arith.constant 896 : index
    %59 = vector.load %arg3[%c0_29, %c896] : memref<1x2048xf32, #tpu.memory_space<vmem>>, vector<1x128xf32>
    %60 = vector.broadcast %59 : vector<1x128xf32> to vector<8x128xf32>
    %61 = arith.mulf %58, %60 : vector<8x128xf32>
    %c0_30 = arith.constant 0 : index
    %c1024 = arith.constant 1024 : index
    %62 = vector.load %arg3[%c0_30, %c1024] : memref<1x2048xf32, #tpu.memory_space<vmem>>, vector<1x128xf32>
    %63 = vector.broadcast %62 : vector<1x128xf32> to vector<8x128xf32>
    %64 = arith.addf %61, %63 : vector<8x128xf32>
    %cst_31 = arith.constant 0.000000e+00 : f32
    %65 = vector.broadcast %cst_31 : f32 to vector<8x128xf32>
    %66 = arith.maximumf %64, %65 : vector<8x128xf32>
    %67 = arith.addf %66, %35 : vector<8x128xf32>
    %c0_32 = arith.constant 0 : index
    %c896_33 = arith.constant 896 : index
    %68 = vector.load %arg2[%c0_32, %c896_33] : memref<128x1280xf32, #tpu.memory_space<vmem>>, vector<128x128xf32>
    %cst_34 = arith.constant dense<0.000000e+00> : vector<8x128xf32>
    %69 = tpu.matmul %67, %68, %cst_34 {dimension_numbers = #tpu.dot_dimension_numbers<[1], [0], [0], [1], [0, 0, 1, 1], [], []>} : vector<8x128xf32>, vector<128x128xf32>, vector<8x128xf32> -> vector<8x128xf32>
    %c0_35 = arith.constant 0 : index
    %c1152 = arith.constant 1152 : index
    %70 = vector.load %arg3[%c0_35, %c1152] : memref<1x2048xf32, #tpu.memory_space<vmem>>, vector<1x128xf32>
    %71 = vector.broadcast %70 : vector<1x128xf32> to vector<8x128xf32>
    %72 = arith.addf %69, %71 : vector<8x128xf32>
    %cst_36 = arith.constant dense<0.000000e+00> : vector<8xf32>
    %73 = vector.multi_reduction <add>, %72, %cst_36 [1] : vector<8x128xf32> to vector<8xf32>
    %74 = vector.shape_cast %73 : vector<8xf32> to vector<8x1xf32>
    %cst_37 = arith.constant 3.125000e-02 : f32
    %75 = vector.broadcast %cst_37 : f32 to vector<8x1xf32>
    %76 = arith.mulf %74, %75 : vector<8x1xf32>
    %77 = arith.mulf %72, %72 : vector<8x128xf32>
    %cst_38 = arith.constant dense<0.000000e+00> : vector<8xf32>
    %78 = vector.multi_reduction <add>, %77, %cst_38 [1] : vector<8x128xf32> to vector<8xf32>
    %79 = vector.shape_cast %78 : vector<8xf32> to vector<8x1xf32>
    %cst_39 = arith.constant 3.125000e-02 : f32
    %80 = vector.broadcast %cst_39 : f32 to vector<8x1xf32>
    %81 = arith.mulf %79, %80 : vector<8x1xf32>
    %82 = vector.broadcast %76 : vector<8x1xf32> to vector<8x128xf32>
    %83 = arith.subf %72, %82 : vector<8x128xf32>
    %84 = arith.mulf %76, %76 : vector<8x1xf32>
    %85 = arith.subf %81, %84 : vector<8x1xf32>
    %cst_40 = arith.constant 9.99999974E-6 : f32
    %86 = vector.broadcast %cst_40 : f32 to vector<8x1xf32>
    %87 = arith.addf %85, %86 : vector<8x1xf32>
    %88 = math.rsqrt %87 : vector<8x1xf32>
    %89 = vector.broadcast %88 : vector<8x1xf32> to vector<8x128xf32>
    %90 = arith.mulf %83, %89 : vector<8x128xf32>
    %c0_41 = arith.constant 0 : index
    %c1280 = arith.constant 1280 : index
    %91 = vector.load %arg3[%c0_41, %c1280] : memref<1x2048xf32, #tpu.memory_space<vmem>>, vector<1x128xf32>
    %92 = vector.broadcast %91 : vector<1x128xf32> to vector<8x128xf32>
    %93 = arith.mulf %90, %92 : vector<8x128xf32>
    %c0_42 = arith.constant 0 : index
    %c1408 = arith.constant 1408 : index
    %94 = vector.load %arg3[%c0_42, %c1408] : memref<1x2048xf32, #tpu.memory_space<vmem>>, vector<1x128xf32>
    %95 = vector.broadcast %94 : vector<1x128xf32> to vector<8x128xf32>
    %96 = arith.addf %93, %95 : vector<8x128xf32>
    %cst_43 = arith.constant 0.000000e+00 : f32
    %97 = vector.broadcast %cst_43 : f32 to vector<8x128xf32>
    %98 = arith.maximumf %96, %97 : vector<8x128xf32>
    %99 = arith.addf %98, %67 : vector<8x128xf32>
    %c0_44 = arith.constant 0 : index
    %c1024_45 = arith.constant 1024 : index
    %100 = vector.load %arg2[%c0_44, %c1024_45] : memref<128x1280xf32, #tpu.memory_space<vmem>>, vector<128x128xf32>
    %cst_46 = arith.constant dense<0.000000e+00> : vector<8x128xf32>
    %101 = tpu.matmul %99, %100, %cst_46 {dimension_numbers = #tpu.dot_dimension_numbers<[1], [0], [0], [1], [0, 0, 1, 1], [], []>} : vector<8x128xf32>, vector<128x128xf32>, vector<8x128xf32> -> vector<8x128xf32>
    %c0_47 = arith.constant 0 : index
    %c1536 = arith.constant 1536 : index
    %102 = vector.load %arg3[%c0_47, %c1536] : memref<1x2048xf32, #tpu.memory_space<vmem>>, vector<1x128xf32>
    %103 = vector.broadcast %102 : vector<1x128xf32> to vector<8x128xf32>
    %104 = arith.addf %101, %103 : vector<8x128xf32>
    %cst_48 = arith.constant dense<0.000000e+00> : vector<8xf32>
    %105 = vector.multi_reduction <add>, %104, %cst_48 [1] : vector<8x128xf32> to vector<8xf32>
    %106 = vector.shape_cast %105 : vector<8xf32> to vector<8x1xf32>
    %cst_49 = arith.constant 3.125000e-02 : f32
    %107 = vector.broadcast %cst_49 : f32 to vector<8x1xf32>
    %108 = arith.mulf %106, %107 : vector<8x1xf32>
    %109 = arith.mulf %104, %104 : vector<8x128xf32>
    %cst_50 = arith.constant dense<0.000000e+00> : vector<8xf32>
    %110 = vector.multi_reduction <add>, %109, %cst_50 [1] : vector<8x128xf32> to vector<8xf32>
    %111 = vector.shape_cast %110 : vector<8xf32> to vector<8x1xf32>
    %cst_51 = arith.constant 3.125000e-02 : f32
    %112 = vector.broadcast %cst_51 : f32 to vector<8x1xf32>
    %113 = arith.mulf %111, %112 : vector<8x1xf32>
    %114 = vector.broadcast %108 : vector<8x1xf32> to vector<8x128xf32>
    %115 = arith.subf %104, %114 : vector<8x128xf32>
    %116 = arith.mulf %108, %108 : vector<8x1xf32>
    %117 = arith.subf %113, %116 : vector<8x1xf32>
    %cst_52 = arith.constant 9.99999974E-6 : f32
    %118 = vector.broadcast %cst_52 : f32 to vector<8x1xf32>
    %119 = arith.addf %117, %118 : vector<8x1xf32>
    %120 = math.rsqrt %119 : vector<8x1xf32>
    %121 = vector.broadcast %120 : vector<8x1xf32> to vector<8x128xf32>
    %122 = arith.mulf %115, %121 : vector<8x128xf32>
    %c0_53 = arith.constant 0 : index
    %c1664 = arith.constant 1664 : index
    %123 = vector.load %arg3[%c0_53, %c1664] : memref<1x2048xf32, #tpu.memory_space<vmem>>, vector<1x128xf32>
    %124 = vector.broadcast %123 : vector<1x128xf32> to vector<8x128xf32>
    %125 = arith.mulf %122, %124 : vector<8x128xf32>
    %c0_54 = arith.constant 0 : index
    %c1792 = arith.constant 1792 : index
    %126 = vector.load %arg3[%c0_54, %c1792] : memref<1x2048xf32, #tpu.memory_space<vmem>>, vector<1x128xf32>
    %127 = vector.broadcast %126 : vector<1x128xf32> to vector<8x128xf32>
    %128 = arith.addf %125, %127 : vector<8x128xf32>
    %cst_55 = arith.constant 0.000000e+00 : f32
    %129 = vector.broadcast %cst_55 : f32 to vector<8x128xf32>
    %130 = arith.maximumf %128, %129 : vector<8x128xf32>
    %131 = arith.addf %130, %99 : vector<8x128xf32>
    %c0_56 = arith.constant 0 : index
    %c1152_57 = arith.constant 1152 : index
    %132 = vector.load %arg2[%c0_56, %c1152_57] : memref<128x1280xf32, #tpu.memory_space<vmem>>, vector<128x128xf32>
    %cst_58 = arith.constant dense<0.000000e+00> : vector<8x128xf32>
    %133 = tpu.matmul %131, %132, %cst_58 {dimension_numbers = #tpu.dot_dimension_numbers<[1], [0], [0], [1], [0, 0, 1, 1], [], []>} : vector<8x128xf32>, vector<128x128xf32>, vector<8x128xf32> -> vector<8x128xf32>
    %c0_59 = arith.constant 0 : index
    %c1920 = arith.constant 1920 : index
    %134 = vector.load %arg3[%c0_59, %c1920] : memref<1x2048xf32, #tpu.memory_space<vmem>>, vector<1x128xf32>
    %135 = vector.broadcast %134 : vector<1x128xf32> to vector<8x128xf32>
    %136 = arith.addf %133, %135 : vector<8x128xf32>
    %c0_60 = arith.constant 0 : index
    %c0_61 = arith.constant 0 : index
    %137 = vector.load %arg6[%c0_60, %c0_61] : memref<8x128xf32, #tpu.memory_space<vmem>>, vector<8x128xf32>
    tpu.vector_store %arg6[%c0_60, %c0_61], %136 {strides = array<i32>} : memref<8x128xf32, #tpu.memory_space<vmem>>, vector<8x128xf32>,
    return
  }
  func.func @transform_0(%arg0: i32) -> (i32, i32) {
    %c0_i32 = arith.constant 0 : i32
    %c0_i32_0 = arith.constant 0 : i32
    return %arg0, %c0_i32 : i32, i32
  }
  func.func @transform_1(%arg0: i32) -> (i32, i32) {
    %c0_i32 = arith.constant 0 : i32
    %c0_i32_0 = arith.constant 0 : i32
    %c0_i32_1 = arith.constant 0 : i32
    return %c0_i32, %c0_i32_0 : i32, i32
  }
  func.func @transform_2(%arg0: i32) -> (i32, i32) {
    %c0_i32 = arith.constant 0 : i32
    %c0_i32_0 = arith.constant 0 : i32
    %c0_i32_1 = arith.constant 0 : i32
    return %c0_i32, %c0_i32_0 : i32, i32
  }
  func.func @transform_3(%arg0: i32) -> (i32, i32) {
    %c0_i32 = arith.constant 0 : i32
    %c0_i32_0 = arith.constant 0 : i32
    %c0_i32_1 = arith.constant 0 : i32
    return %c0_i32, %c0_i32_0 : i32, i32
  }
  func.func @transform_4(%arg0: i32) -> (i32, i32) {
    %c0_i32 = arith.constant 0 : i32
    %c0_i32_0 = arith.constant 0 : i32
    %c0_i32_1 = arith.constant 0 : i32
    return %c0_i32, %c0_i32_0 : i32, i32
  }
  func.func @transform_5(%arg0: i32) -> (i32, i32) {
    %c0_i32 = arith.constant 0 : i32
    %c0_i32_0 = arith.constant 0 : i32
    return %arg0, %c0_i32 : i32, i32
  }
}

</mosaic_0001>

<bundles_post_ra>
// kernel: _lambda_.1
= control target key start
LH: loop header
LB: loop body
LE: loop exit
PB: predicated region body
PF: predicated region fallthrough
CT: control target
= control target key end

     0   :  { %10 = vsyncpa [#allocation3], 0  ;;  %s711_s21 = smov [#allocation2]   ;;  %s712_s23 = smov 1280   ;;  %s869_s0 = inlined_call_operand.vmem [shape: f32[8,128], index: 0, kind: input, shape index: {}]   ;;  %s870_s1 = inlined_call_operand.hbm [shape: f32[128,1280], index: 1, kind: input, shape index: {}]   ;;  %s871_s2 = inlined_call_operand.vmem [shape: f32[1,2048], index: 2, kind: input, shape index: {}]   ;;  %s872_s3 = inlined_call_operand.vmem [shape: f32[128,4], index: 3, kind: input, shape index: {}]   ;;  %s873_s4 = inlined_call_operand.vmem [shape: f32[4,128], index: 4, kind: input, shape index: {}]   ;;  %s874_s5 = inlined_call_operand.vmem [shape: f32[8,128], index: 5, kind: output, shape index: {}]  }
   0x1   :  { %s17_s20 = sshll.u32 %s870_s1, 4  ;;  %s19_s22 = sshll.u32 %s711_s21, 4  ;;  %s18_s20 = int_to_ptr.hbm [resolvable:$true] %s17_s20  ;;  %s20_s22 = int_to_ptr.vmem [resolvable:$true] %s19_s22 }
   0x2   :  { %s713_s24 = smov 80  }
   0x3   :  { %25 = dma.hbm_to_vmem [thread:$0]  %s18_s20, 20480, %s20_s22, [#allocation3], %s712_s23, %s712_s23, %s713_s24  }
   0x4   :  { %709 = dma.done.wait [#allocation3], 20480  }
   0x5   :  { %710 = vsyncadd [#allocation3], 4294946816  ;;  %v131_v0 = vld [vmem:[#allocation2 + $0x4c0] sm:$0xff]  ;;  %v126_v1 = vld [vmem:[#allocation2 + $0x470] sm:$0xff]  ;;  %vm298_vm0 = vcmask 1043456   ;;  %vm294_vm1 = vcmask 31744  }
   0x6   :  { %186 = vmatpush.msra.mxu2 %v131_v0  ;;  %v129_v2 = vld [vmem:[#allocation2 + $0x4b0] sm:$0xff]  ;;  %v130_v3 = vld [vmem:[#allocation2 + $0x4b8] sm:$0xff]  ;;  %v121_v4 = vld [vmem:[#allocation2 + $0x420] sm:$0xff] }
   0x7   :  { %146 = vmatpush.msra.mxu0 %v129_v2  ;;  %166 = vmatpush.msra.mxu1 %v130_v3  ;;  %v124_v5 = vld [vmem:[#allocation2 + $0x460] sm:$0xff]  ;;  %v125_v6 = vld [vmem:[#allocation2 + $0x468] sm:$0xff]  ;;  %v119_v7 = vld [vmem:[#allocation2 + $0x410] sm:$0xff] }
   0x8   :  { %187 = vmatpush.msra.mxu2 %v126_v1  ;;  %v120_v8 = vld [vmem:[#allocation2 + $0x418] sm:$0xff]  ;;  %v116_v9 = vld [vmem:[#allocation2 + $0x3d0] sm:$0xff]  ;;  %v114_v10 = vld [vmem:[#allocation2 + $0x3c0] sm:$0xff] }
   0x9   :  { %147 = vmatpush.msra.mxu0 %v124_v5  ;;  %167 = vmatpush.msra.mxu1 %v125_v6  ;;  %v115_v11 = vld [vmem:[#allocation2 + $0x3c8] sm:$0xff]  ;;  %v111_v12 = vld [vmem:[#allocation2 + $0x380] sm:$0xff]  ;;  %v109_v13 = vld [vmem:[#allocation2 + $0x370] sm:$0xff] }
   0xa   :  { %188 = vmatpush.msra.mxu2 %v121_v4  ;;  %v110_v14 = vld [vmem:[#allocation2 + $0x378] sm:$0xff]  ;;  %v106_v15 = vld [vmem:[#allocation2 + $0x330] sm:$0xff]  ;;  %v104_v16 = vld [vmem:[#allocation2 + $0x320] sm:$0xff] }
   0xb   :  { %148 = vmatpush.msra.mxu0 %v119_v7  ;;  %168 = vmatpush.msra.mxu1 %v120_v8  ;;  %v105_v17 = vld [vmem:[#allocation2 + $0x328] sm:$0xff]  ;;  %v101_v18 = vld [vmem:[#allocation2 + $0x2e0] sm:$0xff]  ;;  %v99_v19 = vld [vmem:[#allocation2 + $0x2d0] sm:$0xff] }
   0xc   :  { %189 = vmatpush.msra.mxu2 %v116_v9  ;;  %v100_v20 = vld [vmem:[#allocation2 + $0x2d8] sm:$0xff]  ;;  %v96_v21 = vld [vmem:[#allocation2 + $0x290] sm:$0xff]  ;;  %v94_v22 = vld [vmem:[#allocation2 + $0x280] sm:$0xff] }
   0xd   :  { %149 = vmatpush.msra.mxu0 %v114_v10  ;;  %169 = vmatpush.msra.mxu1 %v115_v11  ;;  %v95_v23 = vld [vmem:[#allocation2 + $0x288] sm:$0xff]  ;;  %v91_v24 = vld [vmem:[#allocation2 + $0x240] sm:$0xff]  ;;  %v89_v25 = vld [vmem:[#allocation2 + $0x230] sm:$0xff] }
   0xe   :  { %190 = vmatpush.msra.mxu2 %v111_v12  ;;  %v90_v26 = vld [vmem:[#allocation2 + $0x238] sm:$0xff]  ;;  %v86_v27 = vld [vmem:[#allocation2 + $0x1f0] sm:$0xff]  ;;  %v81_v28 = vld [vmem:[#allocation2 + $0x1a0] sm:$0xff] }
   0xf   :  { %150 = vmatpush.msra.mxu0 %v109_v13  ;;  %170 = vmatpush.msra.mxu1 %v110_v14  ;;  %v84_v29 = vld [vmem:[#allocation2 + $0x1e0] sm:$0xff]  ;;  %v85_v30 = vld [vmem:[#allocation2 + $0x1e8] sm:$0xff]  ;;  %v76_v31 = vld [vmem:[#allocation2 + $0x150] sm:$0xff] }
  0x10   :  { %191 = vmatpush.msra.mxu2 %v106_v15  ;;  %v79_v32 = vld [vmem:[#allocation2 + $0x190] sm:$0xff]  ;;  %v80_v33 = vld [vmem:[#allocation2 + $0x198] sm:$0xff]  ;;  %v74_v34 = vld [vmem:[#allocation2 + $0x140] sm:$0xff] }
  0x11   :  { %151 = vmatpush.msra.mxu0 %v104_v16  ;;  %171 = vmatpush.msra.mxu1 %v105_v17  ;;  %v75_v35 = vld [vmem:[#allocation2 + $0x148] sm:$0xff]  ;;  %v71_v36 = vld [vmem:[#allocation2 + $0x100] sm:$0xff]  ;;  %v69_v37 = vld [vmem:[#allocation2 + $0xf0] sm:$0xff] }
  0x12   :  { %192 = vmatpush.msra.mxu2 %v101_v18  ;;  %v70_v38 = vld [vmem:[#allocation2 + $0xf8] sm:$0xff]  ;;  %v66_v39 = vld [vmem:[#allocation2 + $0xb0] sm:$0xff]  ;;  %v64_v40 = vld [vmem:[#allocation2 + $0xa0] sm:$0xff] }
  0x13   :  { %152 = vmatpush.msra.mxu0 %v99_v19  ;;  %172 = vmatpush.msra.mxu1 %v100_v20  ;;  %v65_v41 = vld [vmem:[#allocation2 + $0xa8] sm:$0xff]  ;;  %v61_v42 = vld [vmem:[#allocation2 + $0x60] sm:$0xff]  ;;  %v59_v43 = vld [vmem:[#allocation2 + $0x50] sm:$0xff] }
  0x14   :  { %193 = vmatpush.msra.mxu2 %v96_v21  ;;  %v60_v44 = vld [vmem:[#allocation2 + $0x58] sm:$0xff]  ;;  %v56_v45 = vld [vmem:[#allocation2 + $0x10] sm:$0xff]  ;;  %v750_v46 = vld [vmem:[%s869_s0] sm:$0xff] }
  0x15   :  { %153 = vmatpush.msra.mxu0 %v94_v22  ;;  %173 = vmatpush.msra.mxu1 %v95_v23  ;;  %v54_v47 = vld [vmem:[#allocation2] sm:$0xff]  ;;  %v55_v48 = vld [vmem:[#allocation2 + $0x8] sm:$0xff]  ;;  %v51_v49 = vld [vmem:[%s872_s3 + $0x78] sm:$0xff] }
  0x16   :  { %194 = vmatpush.msra.mxu2 %v91_v24  ;;  %v50_v50 = vld [vmem:[%s872_s3 + $0x70] sm:$0xff]  ;;  %v49_v51 = vld [vmem:[%s872_s3 + $0x68] sm:$0xff]  ;;  %v48_v52 = vld [vmem:[%s872_s3 + $0x60] sm:$0xff] }
  0x17   :  { %154 = vmatpush.msra.mxu0 %v89_v25  ;;  %174 = vmatpush.msra.mxu1 %v90_v26  ;;  %v47_v53 = vld [vmem:[%s872_s3 + $0x58] sm:$0xff]  ;;  %v46_v54 = vld [vmem:[%s872_s3 + $0x50] sm:$0xff]  ;;  %v45_v55 = vld [vmem:[%s872_s3 + $0x48] sm:$0xff] }
  0x18   :  { %195 = vmatpush.msra.mxu2 %v86_v27  ;;  %v44_v56 = vld [vmem:[%s872_s3 + $0x40] sm:$0xff]  ;;  %v43_v57 = vld [vmem:[%s872_s3 + $0x38] sm:$0xff]  ;;  %v42_v58 = vld [vmem:[%s872_s3 + $0x30] sm:$0xff] }
  0x19   :  { %155 = vmatpush.msra.mxu0 %v84_v29  ;;  %175 = vmatpush.msra.mxu1 %v85_v30  ;;  %v41_v59 = vld [vmem:[%s872_s3 + $0x28] sm:$0xff]  ;;  %v40_v60 = vld [vmem:[%s872_s3 + $0x20] sm:$0xff]  ;;  %v39_v61 = vld [vmem:[%s872_s3 + $0x18] sm:$0xff] }
  0x1a   :  { %196 = vmatpush.msra.mxu2 %v81_v28  ;;  %v38_v62 = vld [vmem:[%s872_s3 + $0x10] sm:$0xff]  ;;  %v37_v63 = vld [vmem:[%s872_s3 + $0x8] sm:$0xff]  ;;  %v36_v0 = vld [vmem:[%s872_s3] sm:$0xff] }
  0x1b   :  { %156 = vmatpush.msra.mxu0 %v79_v32  ;;  %176 = vmatpush.msra.mxu1 %v80_v33  ;;  %v132_v1 = vld [vmem:[#allocation2 + $0x4c8] sm:$0xff]  ;;  %v133_v2 = vld [vmem:[#allocation2 + $0x4d0] sm:$0xff]  ;;  %v127_v3 = vld [vmem:[#allocation2 + $0x478] sm:$0xff] }
  0x1c   :  { %197 = vmatpush.msra.mxu2 %v76_v31  ;;  %206 = vmatpush.msra.mxu3 %v132_v1  ;;  %v128_v4 = vld [vmem:[#allocation2 + $0x480] sm:$0xff]  ;;  %v122_v5 = vld [vmem:[#allocation2 + $0x428] sm:$0xff]  ;;  %v123_v6 = vld [vmem:[#allocation2 + $0x430] sm:$0xff] }
  0x1d   :  { %157 = vmatpush.msra.mxu0 %v74_v34  ;;  %177 = vmatpush.msra.mxu1 %v75_v35  ;;  %v117_v7 = vld [vmem:[#allocation2 + $0x3d8] sm:$0xff]  ;;  %v118_v8 = vld [vmem:[#allocation2 + $0x3e0] sm:$0xff]  ;;  %v112_v9 = vld [vmem:[#allocation2 + $0x388] sm:$0xff] }
  0x1e   :  { %198 = vmatpush.msra.mxu2 %v71_v36  ;;  %207 = vmatpush.msra.mxu3 %v127_v3  ;;  %v113_v10 = vld [vmem:[#allocation2 + $0x390] sm:$0xff]  ;;  %v107_v11 = vld [vmem:[#allocation2 + $0x338] sm:$0xff]  ;;  %v108_v12 = vld [vmem:[#allocation2 + $0x340] sm:$0xff] }
  0x1f   :  { %158 = vmatpush.msra.mxu0 %v69_v37  ;;  %178 = vmatpush.msra.mxu1 %v70_v38  ;;  %v102_v13 = vld [vmem:[#allocation2 + $0x2e8] sm:$0xff]  ;;  %v103_v14 = vld [vmem:[#allocation2 + $0x2f0] sm:$0xff]  ;;  %v806_v15 = vld [vmem:[%s871_s2] sm:$0x1f] }
  0x20   :  { %199 = vmatpush.msra.mxu2 %v66_v39  ;;  %208 = vmatpush.msra.mxu3 %v122_v5  ;;  %v136_v16 = vperm.slane %v806_v15, 0  ;;  %v137_v17 = vperm.slane %v806_v15, 1  ;;  %v138_v22 = vperm.slane %v806_v15, 2  ;;  %v97_v27 = vld [vmem:[#allocation2 + $0x298] sm:$0xff]  ;;  %v98_v28 = vld [vmem:[#allocation2 + $0x2a0] sm:$0xff]  ;;  %v92_v29 = vld [vmem:[#allocation2 + $0x248] sm:$0xff] }
  0x21   :  { %159 = vmatpush.msra.mxu0 %v64_v40  ;;  %179 = vmatpush.msra.mxu1 %v65_v41  ;;  %v93_v30 = vld [vmem:[#allocation2 + $0x250] sm:$0xff]  ;;  %v87_v31 = vld [vmem:[#allocation2 + $0x1f8] sm:$0xff]  ;;  %v88_v32 = vld [vmem:[#allocation2 + $0x200] sm:$0xff] }
  0x22   :  { %200 = vmatpush.msra.mxu2 %v61_v42  ;;  %209 = vmatpush.msra.mxu3 %v117_v7  ;;  %v82_v33 = vld [vmem:[#allocation2 + $0x1a8] sm:$0xff]  ;;  %v83_v34 = vld [vmem:[#allocation2 + $0x1b0] sm:$0xff]  ;;  %v77_v35 = vld [vmem:[#allocation2 + $0x158] sm:$0xff] }
  0x23   :  { %160 = vmatpush.msra.mxu0 %v59_v43  ;;  %180 = vmatpush.msra.mxu1 %v60_v44  ;;  %v78_v36 = vld [vmem:[#allocation2 + $0x160] sm:$0xff]  ;;  %v72_v37 = vld [vmem:[#allocation2 + $0x108] sm:$0xff]  ;;  %v73_v38 = vld [vmem:[#allocation2 + $0x110] sm:$0xff] }
  0x24   :  { %201 = vmatpush.msra.mxu2 %v56_v45  ;;  %210 = vmatpush.msra.mxu3 %v112_v9  ;;  %v67_v39 = vld [vmem:[#allocation2 + $0xb8] sm:$0xff]  ;;  %v68_v40 = vld [vmem:[#allocation2 + $0xc0] sm:$0xff]  ;;  %v62_v41 = vld [vmem:[#allocation2 + $0x68] sm:$0xff] }
  0x25   :  { %202 = vmatmul.f32.vlgmr.msra.gmra.mxu2 %v750_v46  ;;  %161 = vmatpush.msra.mxu0 %v54_v47  ;;  %v63_v42 = vld [vmem:[#allocation2 + $0x70] sm:$0xff]  ;;  %v57_v43 = vld [vmem:[#allocation2 + $0x18] sm:$0xff]  ;;  %v58_v44 = vld [vmem:[#allocation2 + $0x20] sm:$0xff] }
  0x26   :  { %181 = vmatpush.msra.mxu1 %v55_v48  ;;  %162 = vmatmul.f32.vlgmr.msra.gmra.mxu0 %v750_v46  ;;  %v52_v45 = vld [vmem:[%s873_s4] sm:$0xf]  ;;  %v363_v47 = vld [vmem:[#allocation2 + $0x4d8] sm:$0xff]  ;;  %v362_v48 = vld [vmem:[#allocation2 + $0x488] sm:$0xff] }
  0x27   :  { %182 = vmatmul.f32.vlgmr.msra.gmra.mxu1 %v750_v46  ;;  %268 = vmatpush.msrb.mxu2 %v51_v49  ;;  %v352_v1 = vld [vmem:[#allocation2 + $0x168] sm:$0xff]  ;;  %v403_v7 = vld [vmem:[#allocation2 + $0x490] sm:$0xff] }
  0x28   :  { %247 = vmatpush.msrb.mxu1 %v51_v49  ;;  %226 = vmatpush.msrb.mxu0 %v133_v2  ;;  %v361_v49 = vld [vmem:[#allocation2 + $0x438] sm:$0xff]  ;;  %v350_v3 = vld [vmem:[#allocation2 + $0xc8] sm:$0xff]  ;;  %v401_v9 = vld [vmem:[#allocation2 + $0x3f0] sm:$0xff] }
  0x29   :  { %269 = vmatpush.msrb.mxu2 %v50_v50  ;;  %211 = vmatpush.msra.mxu3 %v107_v11  ;;  %v351_v2 = vld [vmem:[#allocation2 + $0x118] sm:$0xff]  ;;  %v348_v5 = vld [vmem:[#allocation2 + $0x28] sm:$0xff]  ;;  %v399_v11 = vld [vmem:[#allocation2 + $0x350] sm:$0xff] }
  0x2a   :  { %248 = vmatpush.msrb.mxu1 %v50_v50  ;;  %227 = vmatpush.msrb.mxu0 %v128_v4  ;;  %v360_v50 = vld [vmem:[#allocation2 + $0x3e8] sm:$0xff]  ;;  %v349_v4 = vld [vmem:[#allocation2 + $0x78] sm:$0xff] }
  0x2b   :  { %270 = vmatpush.msrb.mxu2 %v49_v51  ;;  %212 = vmatpush.msra.mxu3 %v102_v13  ;;  %v397_v13 = vld [vmem:[#allocation2 + $0x2b0] sm:$0xff] }
  0x2c   :  { %249 = vmatpush.msrb.mxu1 %v49_v51  ;;  %228 = vmatpush.msrb.mxu0 %v123_v6  ;;  %v359_v51 = vld [vmem:[#allocation2 + $0x398] sm:$0xff]  ;;  %v404_v6 = vld [vmem:[#allocation2 + $0x4e0] sm:$0xff] }
  0x2d   :  { %271 = vmatpush.msrb.mxu2 %v48_v52  ;;  %213 = vmatpush.msra.mxu3 %v97_v27 }
  0x2e   :  { %250 = vmatpush.msrb.mxu1 %v48_v52  ;;  %229 = vmatpush.msrb.mxu0 %v118_v8  ;;  %v402_v8 = vld [vmem:[#allocation2 + $0x440] sm:$0xff] }
  0x2f   :  { %272 = vmatpush.msrb.mxu2 %v47_v53  ;;  %214 = vmatpush.msra.mxu3 %v92_v29 }
  0x30   :  { %251 = vmatpush.msrb.mxu1 %v47_v53  ;;  %230 = vmatpush.msrb.mxu0 %v113_v10  ;;  %v400_v10 = vld [vmem:[#allocation2 + $0x3a0] sm:$0xff] }
  0x31   :  { %273 = vmatpush.msrb.mxu2 %v46_v54  ;;  %215 = vmatpush.msra.mxu3 %v87_v31  ;;  %v391_v31 = vld [vmem:[#allocation2 + $0xd0] sm:$0xff] }
  0x32   :  { %252 = vmatpush.msrb.mxu1 %v46_v54  ;;  %231 = vmatpush.msrb.mxu0 %v108_v12  ;;  %v398_v12 = vld [vmem:[#allocation2 + $0x300] sm:$0xff] }
  0x33   :  { %274 = vmatpush.msrb.mxu2 %v45_v55  ;;  %216 = vmatpush.msra.mxu3 %v82_v33  ;;  %v389_v33 = vld [vmem:[#allocation2 + $0x30] sm:$0xff] }
  0x34   :  { %253 = vmatpush.msrb.mxu1 %v45_v55  ;;  %232 = vmatpush.msrb.mxu0 %v103_v14  ;;  %v396_v14 = vld [vmem:[#allocation2 + $0x260] sm:$0xff] }
  0x35   :  { %275 = vmatpush.msrb.mxu2 %v44_v56  ;;  %217 = vmatpush.msra.mxu3 %v77_v35 }
  0x36   :  { %254 = vmatpush.msrb.mxu1 %v44_v56  ;;  %233 = vmatpush.msrb.mxu0 %v98_v28 }
  0x37   :  { %276 = vmatpush.msrb.mxu2 %v43_v57  ;;  %218 = vmatpush.msra.mxu3 %v72_v37  ;;  %v665_v37 = vld [vmem:[%s871_s2 + $0x6] ss:$0 sm:$0xff] }
  0x38   :  { %255 = vmatpush.msrb.mxu1 %v43_v57  ;;  %234 = vmatpush.msrb.mxu0 %v93_v30 }
  0x39   :  { %277 = vmatpush.msrb.mxu2 %v42_v58  ;;  %219 = vmatpush.msra.mxu3 %v67_v39 }
  0x3a   :  { %256 = vmatpush.msrb.mxu1 %v42_v58  ;;  %235 = vmatpush.msrb.mxu0 %v88_v32  ;;  %v390_v32 = vld [vmem:[#allocation2 + $0x80] sm:$0xff] }
  0x3b   :  { %278 = vmatpush.msrb.mxu2 %v41_v59  ;;  %220 = vmatpush.msra.mxu3 %v62_v41  ;;  %v478_v41 = vld [vmem:[#allocation2 + $0x4e8] sm:$0xff] }
  0x3c   :  { %257 = vmatpush.msrb.mxu1 %v41_v59  ;;  %236 = vmatpush.msrb.mxu0 %v83_v34  ;;  %v358_v59 = vld [vmem:[#allocation2 + $0x348] sm:$0xff] }
  0x3d   :  { %279 = vmatpush.msrb.mxu2 %v40_v60  ;;  %221 = vmatpush.msra.mxu3 %v57_v43  ;;  %v476_v43 = vld [vmem:[#allocation2 + $0x448] sm:$0xff] }
  0x3e   :  { %258 = vmatpush.msrb.mxu1 %v40_v60  ;;  %237 = vmatpush.msrb.mxu0 %v78_v36  ;;  %v357_v60 = vld [vmem:[#allocation2 + $0x2f8] sm:$0xff] }
  0x3f   :  { %280 = vmatpush.msrb.mxu2 %v39_v61  ;;  %222 = vmatmul.f32.vlgmr.msra.gmra.mxu3 %v750_v46 }
  0x40   :  { %259 = vmatpush.msrb.mxu1 %v39_v61  ;;  %238 = vmatpush.msrb.mxu0 %v73_v38  ;;  %v356_v61 = vld [vmem:[#allocation2 + $0x2a8] sm:$0xff] }
  0x41   :  { %281 = vmatpush.msrb.mxu2 %v38_v62  ;;  %659 = vmatpush.msk.msrb.mxu3 %vm298_vm0, %v52_v45 }
  0x42   :  { %260 = vmatpush.msrb.mxu1 %v38_v62  ;;  %239 = vmatpush.msrb.mxu0 %v68_v40  ;;  %v355_v62 = vld [vmem:[#allocation2 + $0x258] sm:$0xff] }
  0x43   :  { %282 = vmatpush.msrb.mxu2 %v37_v63  ;;  %368 = vmatpush.msra.mxu3 %v363_v47  ;;  %v473_v47 = vld [vmem:[#allocation2 + $0x358] sm:$0xff] }
  0x44   :  { %261 = vmatpush.msrb.mxu1 %v37_v63  ;;  %240 = vmatpush.msrb.mxu0 %v63_v42  ;;  %v354_v63 = vld [vmem:[#allocation2 + $0x208] sm:$0xff]  ;;  %v477_v42 = vld [vmem:[#allocation2 + $0x498] sm:$0xff] }
  0x45   :  { %283 = vmatpush.msrb.mxu2 %v36_v0  ;;  %369 = vmatpush.msra.mxu3 %v362_v48  ;;  %v472_v48 = vld [vmem:[#allocation2 + $0x308] sm:$0xff] }
  0x46   :  { %262 = vmatpush.msrb.mxu1 %v36_v0  ;;  %241 = vmatpush.msrb.mxu0 %v58_v44  ;;  %v353_v0 = vld [vmem:[#allocation2 + $0x1b8] sm:$0xff] }
  0x47   :  { %242 = vmatmul.f32.vlgmr.msrb.gmra.mxu0 %v750_v46  ;;  %370 = vmatpush.msra.mxu3 %v361_v49  ;;  %v475_v44 = vld [vmem:[#allocation2 + $0x3f8] sm:$0xff] }
  0x48   :  { %657 = vmatpush.msk.msra.mxu0 %vm298_vm0, %v52_v45  ;;  %483 = vmatpush.msra.mxu1 %v478_v41  ;;  %v474_v45 = vld [vmem:[#allocation2 + $0x3a8] sm:$0xff]  ;;  %v471_v49 = vld [vmem:[#allocation2 + $0x2b8] sm:$0xff] }
  0x49   :  { %371 = vmatpush.msra.mxu3 %v360_v50  ;;  %v470_v50 = vld [vmem:[#allocation2 + $0x268] sm:$0xff] }
  0x4a   :  { %409 = vmatpush.msrb.mxu0 %v404_v6  ;;  %484 = vmatpush.msra.mxu1 %v477_v42 }
  0x4b   :  { %372 = vmatpush.msra.mxu3 %v359_v51  ;;  %v469_v51 = vld [vmem:[#allocation2 + $0x218] sm:$0xff] }
  0x4c   :  { %410 = vmatpush.msrb.mxu0 %v403_v7  ;;  %485 = vmatpush.msra.mxu1 %v476_v43  ;;  %v666_v7 = vld [vmem:[%s871_s2 + $0x7] ss:$0 sm:$0xff] }
  0x4d   :  { %373 = vmatpush.msra.mxu3 %v358_v59 }
  0x4e   :  { %411 = vmatpush.msrb.mxu0 %v402_v8  ;;  %486 = vmatpush.msra.mxu1 %v475_v44 }
  0x4f   :  { %374 = vmatpush.msra.mxu3 %v357_v60 }
  0x50   :  { %412 = vmatpush.msrb.mxu0 %v401_v9  ;;  %487 = vmatpush.msra.mxu1 %v474_v45 }
  0x51   :  { %375 = vmatpush.msra.mxu3 %v356_v61 }
  0x52   :  { %413 = vmatpush.msrb.mxu0 %v400_v10  ;;  %488 = vmatpush.msra.mxu1 %v473_v47  ;;  %v667_v10 = vld [vmem:[%s871_s2 + $0x8] ss:$0 sm:$0xff] }
  0x53   :  { %376 = vmatpush.msra.mxu3 %v355_v62 }
  0x54   :  { %414 = vmatpush.msrb.mxu0 %v399_v11  ;;  %489 = vmatpush.msra.mxu1 %v472_v48 }
  0x55   :  { %377 = vmatpush.msra.mxu3 %v354_v63 }
  0x56   :  { %415 = vmatpush.msrb.mxu0 %v398_v12  ;;  %490 = vmatpush.msra.mxu1 %v471_v49 }
  0x57   :  { %378 = vmatpush.msra.mxu3 %v353_v0 }
  0x58   :  { %416 = vmatpush.msrb.mxu0 %v397_v13  ;;  %491 = vmatpush.msra.mxu1 %v470_v50  ;;  %v669_v50 = vld [vmem:[%s871_s2 + $0xa] ss:$0 sm:$0xff] }
  0x59   :  { %379 = vmatpush.msra.mxu3 %v352_v1 }
  0x5a   :  { %417 = vmatpush.msrb.mxu0 %v396_v14  ;;  %492 = vmatpush.msra.mxu1 %v469_v51 }
  0x5b   :  { %380 = vmatpush.msra.mxu3 %v351_v2 }
  0x5d   :  { %381 = vmatpush.msra.mxu3 %v350_v3 }
  0x5f   :  { %382 = vmatpush.msra.mxu3 %v349_v4 }
  0x61   :  { %383 = vmatpush.msra.mxu3 %v348_v5 }
  0xa3   :  { %v163_v18 = vpop.f32.mrf.mxu0 }
  0xa4   :  { %v164_v19 = vadd.f32 %v163_v18, %v136_v16  ;;  %v183_v20 = vpop.f32.mrf.mxu1  ;;  %v394_v18 = vld [vmem:[#allocation2 + $0x1c0] sm:$0xff] }
  0xa5   :  { %v184_v21 = vadd.f32 %v183_v20, %v137_v17  ;;  %v395_v17 = vld [vmem:[#allocation2 + $0x210] sm:$0xff]  ;;  %v139_v20 = vperm.slane %v806_v15, 3 }
  0xa6   :  { %418 = vmatpush.msrb.mxu0 %v395_v17 }
  0xa7   :  { %v246_v23 = vmul.f32 %v184_v21, %v164_v19  ;;  %v393_v21 = vld [vmem:[#allocation2 + $0x170] sm:$0xff] }
  0xa8   :  { %v203_v24 = vpop.f32.mrf.mxu2  ;;  %419 = vmatpush.msrb.mxu0 %v394_v18 }
  0xa9   :  { %v204_v25 = vadd.f32 %v203_v24, %v138_v22  ;;  %263 = vmatmul.f32.vlgmr.msrb.gmra.mxu1 %v246_v23  ;;  %v140_v22 = vperm.slane %v806_v15, 4  ;;  %v392_v23 = vld [vmem:[#allocation2 + $0x120] sm:$0xff] }
  0xaa   :  { %420 = vmatpush.msrb.mxu0 %v393_v21  ;;  %v664_v15 = vld [vmem:[%s871_s2 + $0x5] ss:$0 sm:$0xff] }
  0xab   :  { %v267_v26 = vmul.f32 %v204_v25, %v164_v19  ;;  %v551_v21 = vld [vmem:[#allocation2 + $0x4a0] sm:$0xff] }
  0xac   :  { %421 = vmatpush.msrb.mxu0 %v392_v23  ;;  %v549_v23 = vld [vmem:[#allocation2 + $0x400] sm:$0xff] }
  0xad   :  { %284 = vmatmul.f32.vlgmr.msrb.gmra.mxu2 %v267_v26 }
  0xae   :  { %422 = vmatpush.msrb.mxu0 %v391_v31 }
  0xb0   :  { %423 = vmatpush.msrb.mxu0 %v390_v32  ;;  %v541_v32 = vld [vmem:[#allocation2 + $0x180] sm:$0xff] }
  0xb2   :  { %424 = vmatpush.msrb.mxu0 %v389_v33  ;;  %v540_v33 = vld [vmem:[#allocation2 + $0x130] sm:$0xff] }
  0xc2   :  { %v223_v19 = vpop.f32.mrf.mxu3 }
  0xc3   :  { %v224_v24 = vadd.f32 %v223_v19, %v139_v20  ;;  %v552_v20 = vld [vmem:[#allocation2 + $0x4f0] sm:$0xff] }
  0xc4   :  { %v243_v16 = vpop.f32.mrf.mxu0  ;;  %557 = vmatpush.msra.mxu2 %v552_v20 }
  0xc5   :  { %v244_v26 = vadd.f32 %v243_v16, %v140_v22  ;;  %v668_v16 = vld [vmem:[%s871_s2 + $0x9] ss:$0 sm:$0xff]  ;;  %v550_v22 = vld [vmem:[#allocation2 + $0x450] sm:$0xff] }
  0xc6   :  { %558 = vmatpush.msra.mxu2 %v551_v21 }
  0xc8   :  { %559 = vmatpush.msra.mxu2 %v550_v22 }
  0xca   :  { %560 = vmatpush.msra.mxu2 %v549_v23 }
 0x126   :  { %v264_v52 = vpop.f32.mrf.mxu1 }
 0x130   :  { %v285_v53 = vpop.f32.mrf.mxu2 }
 0x131   :  { %v288_v46 = vsub.f32 %v285_v53, %v264_v52  ;;  %v468_v52 = vld [vmem:[#allocation2 + $0x1c8] sm:$0xff] }
 0x132   :  { %493 = vmatpush.msra.mxu1 %v468_v52 }
 0x133   :  { %v289_v54 = vmul.f32 1.442695, %v288_v46  ;;  %v467_v46 = vld [vmem:[#allocation2 + $0x178] sm:$0xff] }
 0x134   :  { %494 = vmatpush.msra.mxu1 %v467_v46 }
 0x135   :  { %675 = vpow2.f32 %v289_v54  ;;  %v466_v54 = vld [vmem:[#allocation2 + $0x128] sm:$0xff] }
 0x136   :  { %495 = vmatpush.msra.mxu1 %v466_v54 }
 0x13b   :  { %v676_v55 = vpop.eup %675 }
 0x13c   :  { %v291_v56 = vadd.f32 1.0, %v676_v55  ;;  %v465_v55 = vld [vmem:[#allocation2 + $0xd8] sm:$0xff] }
 0x13d   :  { %496 = vmatpush.msra.mxu1 %v465_v55 }
 0x13e   :  { %677 = vrcp.f32 %v291_v56 }
 0x144   :  { %v678_v57 = vpop.eup %677 }
 0x145   :  { %658 = vmatmul.msk.f32.vlgmr.msra.gmra.mxu0 %vm294_vm1, %v678_v57  ;;  %v293_v58 = vsub.f32 1.0, %v678_v57  ;;  %v464_v57 = vld [vmem:[#allocation2 + $0x88] sm:$0xff] }
 0x146   :  { %497 = vmatpush.msra.mxu1 %v464_v57  ;;  %v671_v57 = vld [vmem:[%s871_s2 + $0xc] ss:$0 sm:$0xff] }
 0x147   :  { %660 = vmatmul.msk.f32.vlgmr.msrb.gmra.mxu3 %vm294_vm1, %v293_v58  ;;  %v463_v58 = vld [vmem:[#allocation2 + $0x38] sm:$0xff] }
 0x148   :  { %498 = vmatpush.msra.mxu1 %v463_v58 }
 0x1c2   :  { %v319_v25 = vpop.f32.mrf.mxu0 }
 0x1c3   :  { %v345_v28 = vmul.f32 %v319_v25, %v224_v24  ;;  %v548_v24 = vld [vmem:[#allocation2 + $0x3b0] sm:$0xff]  ;;  %v547_v25 = vld [vmem:[#allocation2 + $0x360] sm:$0xff] }
 0x1c4   :  { %561 = vmatpush.msra.mxu2 %v548_v24 }
 0x1c6   :  { %562 = vmatpush.msra.mxu2 %v547_v25 }
 0x1ca   :  { %v342_v27 = vpop.f32.mrf.mxu3 }
 0x1cb   :  { %v346_v29 = vmul.f32 %v342_v27, %v244_v26  ;;  %v546_v26 = vld [vmem:[#allocation2 + $0x310] sm:$0xff]  ;;  %v545_v27 = vld [vmem:[#allocation2 + $0x2c0] sm:$0xff] }
 0x1cc   :  { %563 = vmatpush.msra.mxu2 %v546_v26 }
 0x1cd   :  { %v347_v30 = vadd.f32 %v346_v29, %v345_v28  ;;  %v544_v28 = vld [vmem:[#allocation2 + $0x270] sm:$0xff]  ;;  %v543_v29 = vld [vmem:[#allocation2 + $0x220] sm:$0xff] }
 0x1ce   :  { %564 = vmatpush.msra.mxu2 %v545_v27 }
 0x1cf   :  { %384 = vmatmul.f32.vlgmr.msra.gmra.mxu3 %v347_v30  ;;  %v542_v30 = vld [vmem:[#allocation2 + $0x1d0] sm:$0xff] }
 0x1d0   :  { %565 = vmatpush.msra.mxu2 %v544_v28  ;;  %v672_v28 = vld [vmem:[%s871_s2 + $0xd] ss:$0 sm:$0xff] }
 0x1d2   :  { %566 = vmatpush.msra.mxu2 %v543_v29 }
 0x1d4   :  { %567 = vmatpush.msra.mxu2 %v542_v30 }
 0x1d6   :  { %568 = vmatpush.msra.mxu2 %v541_v32 }
 0x1d8   :  { %569 = vmatpush.msra.mxu2 %v540_v33 }
 0x252   :  { %v385_v34 = vpop.f32.mrf.mxu3 }
 0x253   :  { %v821_v35 = vadd.f32 %v664_v15, %v385_v34  ;;  %v539_v15 = vld [vmem:[#allocation2 + $0xe0] sm:$0xff] }
 0x254   :  { %570 = vmatpush.msra.mxu2 %v539_v15 }
 0x255   :  { %v388_v36 = vmax.f32 %v821_v35, 0.0  ;;  %v538_v35 = vld [vmem:[#allocation2 + $0x90] sm:$0xff] }
 0x256   :  { %571 = vmatpush.msra.mxu2 %v538_v35  ;;  %v674_v35 = vld [vmem:[%s871_s2 + $0xf] ss:$0 sm:$0xff] }
 0x257   :  { %425 = vmatmul.f32.vlgmr.msrb.gmra.mxu0 %v388_v36 }
 0x2d4   :  { %v426_v38 = vpop.f32.mrf.mxu0 }
 0x2d5   :  { %v427_v39 = vadd.f32 %v665_v37, %v426_v38 }
 0x2d7   :  { %429 = vadd.xlane.f32.xlu0 %v427_v39  ;;  %v432_v40 = vmul.f32 %v427_v39, %v427_v39 }
 0x2df   :  { %433 = vadd.xlane.f32.xlu0 %v432_v40 }
 0x34a   :  { %v430_v53 = vpop.xlane.xlu0 %429 }
 0x34b   :  { %v431_v56 = vmul.f32 0.03125, %v430_v53  ;;  %v670_v53 = vld [vmem:[%s871_s2 + $0xb] ss:$0 sm:$0xff] }
 0x34d   :  { %v437_v60 = vmul.f32 %v431_v56, %v431_v56  ;;  %v436_v6 = vsub.f32 %v427_v39, %v431_v56 }
 0x352   :  { %v434_v59 = vpop.xlane.xlu0 %433 }
 0x353   :  { %v435_v61 = vmul.f32 0.03125, %v434_v59 }
 0x355   :  { %v438_v62 = vsub.f32 %v435_v61, %v437_v60  ;;  %v626_v61 = vld [vmem:[#allocation2 + $0x4f8] sm:$0xff] }
 0x356   :  { %631 = vmatpush.msrb.mxu3 %v626_v61 }
 0x357   :  { %v439_v63 = vadd.f32 1e-05, %v438_v62  ;;  %v625_v62 = vld [vmem:[#allocation2 + $0x4a8] sm:$0xff] }
 0x358   :  { %632 = vmatpush.msrb.mxu3 %v625_v62 }
 0x359   :  { %679 = vrsqrt.f32 %v439_v63  ;;  %vm446_vm3 = vweird.f32 %v439_v63 }
 0x35f   :  { %v680_v0 = vpop.eup %679 }
 0x360   :  { %v441_v1 = vmul.f32 %v680_v0, %v439_v63  ;;  %vm447_vm2 = vweird.f32 %v680_v0  ;;  %v624_v63 = vld [vmem:[#allocation2 + $0x458] sm:$0xff] }
 0x361   :  { %vm448_vm4 = vmor %vm446_vm3, %vm447_vm2  ;;  %633 = vmatpush.msrb.mxu3 %v624_v63 }
 0x362   :  { %v442_v2 = vmul.f32 %v680_v0, %v441_v1  ;;  %v622_v1 = vld [vmem:[#allocation2 + $0x3b8] sm:$0xff] }
 0x364   :  { %v443_v3 = vmul.f32 0.5, %v442_v2  ;;  %v621_v2 = vld [vmem:[#allocation2 + $0x368] sm:$0xff] }
 0x366   :  { %v444_v4 = vsub.f32 1.5, %v443_v3  ;;  %v620_v3 = vld [vmem:[#allocation2 + $0x318] sm:$0xff] }
 0x368   :  { %v445_v5 = vmul.f32 %v680_v0, %v444_v4  ;;  %v619_v4 = vld [vmem:[#allocation2 + $0x2c8] sm:$0xff] }
 0x36a   :  { %v449_v8 = vsel %vm448_vm4, %v680_v0, %v445_v5  ;;  %v623_v0 = vld [vmem:[#allocation2 + $0x408] sm:$0xff]  ;;  %v618_v5 = vld [vmem:[#allocation2 + $0x278] sm:$0xff] }
 0x36b   :  { %v450_v9 = vmul.f32 %v449_v8, %v436_v6  ;;  %634 = vmatpush.msrb.mxu3 %v623_v0  ;;  %v617_v6 = vld [vmem:[#allocation2 + $0x228] sm:$0xff] }
 0x36d   :  { %v455_v11 = vmul.f32 %v666_v7, %v450_v9  ;;  %635 = vmatpush.msrb.mxu3 %v622_v1  ;;  %v616_v7 = vld [vmem:[#allocation2 + $0x1d8] sm:$0xff]  ;;  %v615_v9 = vld [vmem:[#allocation2 + $0x188] sm:$0xff] }
 0x36f   :  { %v460_v12 = vadd.f32 %v667_v10, %v455_v11  ;;  %636 = vmatpush.msrb.mxu3 %v621_v2  ;;  %v614_v10 = vld [vmem:[#allocation2 + $0x138] sm:$0xff]  ;;  %v613_v11 = vld [vmem:[#allocation2 + $0xe8] sm:$0xff] }
 0x371   :  { %v461_v13 = vmax.f32 %v460_v12, 0.0  ;;  %637 = vmatpush.msrb.mxu3 %v620_v3 }
 0x373   :  { %v837_v14 = vadd.f32 %v461_v13, %v388_v36  ;;  %v537_v36 = vld [vmem:[#allocation2 + $0x40] sm:$0xff]  ;;  %638 = vmatpush.msrb.mxu3 %v619_v4  ;;  %v612_v13 = vld [vmem:[#allocation2 + $0x98] sm:$0xff] }
 0x374   :  { %572 = vmatpush.msra.mxu2 %v537_v36 }
 0x375   :  { %499 = vmatmul.f32.vlgmr.msra.gmra.mxu1 %v837_v14  ;;  %639 = vmatpush.msrb.mxu3 %v618_v5 }
 0x377   :  { %640 = vmatpush.msrb.mxu3 %v617_v6 }
 0x379   :  { %641 = vmatpush.msrb.mxu3 %v616_v7 }
 0x37b   :  { %642 = vmatpush.msrb.mxu3 %v615_v9 }
 0x37d   :  { %643 = vmatpush.msrb.mxu3 %v614_v10 }
 0x37f   :  { %644 = vmatpush.msrb.mxu3 %v613_v11 }
 0x381   :  { %645 = vmatpush.msrb.mxu3 %v612_v13 }
 0x3f2   :  { %v500_v17 = vpop.f32.mrf.mxu1 }
 0x3f3   :  { %v501_v18 = vadd.f32 %v668_v16, %v500_v17 }
 0x3f5   :  { %503 = vadd.xlane.f32.xlu1 %v501_v18  ;;  %v506_v19 = vmul.f32 %v501_v18, %v501_v18 }
 0x3fd   :  { %507 = vadd.xlane.f32.xlu1 %v506_v19 }
 0x468   :  { %v504_v31 = vpop.xlane.xlu1 %503 }
 0x469   :  { %v505_v34 = vmul.f32 0.03125, %v504_v31  ;;  %v673_v31 = vld [vmem:[%s871_s2 + $0xe] ss:$0 sm:$0xff] }
 0x46b   :  { %v511_v38 = vmul.f32 %v505_v34, %v505_v34  ;;  %v510_v49 = vsub.f32 %v501_v18, %v505_v34 }
 0x470   :  { %v508_v37 = vpop.xlane.xlu1 %507 }
 0x471   :  { %v509_v39 = vmul.f32 0.03125, %v508_v37 }
 0x473   :  { %v512_v40 = vsub.f32 %v509_v39, %v511_v38 }
 0x475   :  { %v513_v41 = vadd.f32 1e-05, %v512_v40 }
 0x477   :  { %681 = vrsqrt.f32 %v513_v41  ;;  %vm520_vm6 = vweird.f32 %v513_v41 }
 0x47d   :  { %v682_v42 = vpop.eup %681 }
 0x47e   :  { %v515_v43 = vmul.f32 %v682_v42, %v513_v41  ;;  %vm521_vm5 = vweird.f32 %v682_v42 }
 0x47f   :  { %vm522_vm7 = vmor %vm520_vm6, %vm521_vm5 }
 0x480   :  { %v516_v44 = vmul.f32 %v682_v42, %v515_v43 }
 0x482   :  { %v517_v45 = vmul.f32 0.5, %v516_v44 }
 0x484   :  { %v518_v47 = vsub.f32 1.5, %v517_v45 }
 0x486   :  { %v519_v48 = vmul.f32 %v682_v42, %v518_v47 }
 0x488   :  { %v523_v51 = vsel %vm522_vm7, %v682_v42, %v519_v48 }
 0x489   :  { %v524_v52 = vmul.f32 %v523_v51, %v510_v49 }
 0x48b   :  { %v529_v46 = vmul.f32 %v669_v50, %v524_v52 }
 0x48d   :  { %v534_v54 = vadd.f32 %v670_v53, %v529_v46 }
 0x48f   :  { %v535_v55 = vmax.f32 %v534_v54, 0.0 }
 0x491   :  { %v850_v56 = vadd.f32 %v535_v55, %v837_v14  ;;  %v611_v14 = vld [vmem:[#allocation2 + $0x48] sm:$0xff] }
 0x492   :  { %646 = vmatpush.msrb.mxu3 %v611_v14 }
 0x493   :  { %573 = vmatmul.f32.vlgmr.msra.gmra.mxu2 %v850_v56 }
 0x516   :  { %v574_v58 = vpop.f32.mrf.mxu2 }
 0x517   :  { %v575_v59 = vadd.f32 %v671_v57, %v574_v58 }
 0x519   :  { %577 = vadd.xlane.f32.xlu2 %v575_v59  ;;  %v580_v60 = vmul.f32 %v575_v59, %v575_v59 }
 0x521   :  { %581 = vadd.xlane.f32.xlu2 %v580_v60 }
 0x58c   :  { %v578_v8 = vpop.xlane.xlu2 %577 }
 0x58d   :  { %v579_v12 = vmul.f32 0.03125, %v578_v8 }
 0x58f   :  { %v585_v17 = vmul.f32 %v579_v12, %v579_v12  ;;  %v584_v27 = vsub.f32 %v575_v59, %v579_v12 }
 0x594   :  { %v582_v16 = vpop.xlane.xlu2 %581 }
 0x595   :  { %v583_v18 = vmul.f32 0.03125, %v582_v16 }
 0x597   :  { %v586_v19 = vsub.f32 %v583_v18, %v585_v17 }
 0x599   :  { %v587_v20 = vadd.f32 1e-05, %v586_v19 }
 0x59b   :  { %683 = vrsqrt.f32 %v587_v20  ;;  %vm594_vm9 = vweird.f32 %v587_v20 }
 0x5a1   :  { %v684_v21 = vpop.eup %683 }
 0x5a2   :  { %v589_v22 = vmul.f32 %v684_v21, %v587_v20  ;;  %vm595_vm8 = vweird.f32 %v684_v21 }
 0x5a3   :  { %vm596_vm10 = vmor %vm594_vm9, %vm595_vm8 }
 0x5a4   :  { %v590_v23 = vmul.f32 %v684_v21, %v589_v22 }
 0x5a6   :  { %v591_v24 = vmul.f32 0.5, %v590_v23 }
 0x5a8   :  { %v592_v25 = vsub.f32 1.5, %v591_v24 }
 0x5aa   :  { %v593_v26 = vmul.f32 %v684_v21, %v592_v25 }
 0x5ac   :  { %v597_v29 = vsel %vm596_vm10, %v684_v21, %v593_v26 }
 0x5ad   :  { %v598_v30 = vmul.f32 %v597_v29, %v584_v27 }
 0x5af   :  { %v603_v32 = vmul.f32 %v672_v28, %v598_v30 }
 0x5b1   :  { %v608_v33 = vadd.f32 %v673_v31, %v603_v32 }
 0x5b3   :  { %v609_v15 = vmax.f32 %v608_v33, 0.0 }
 0x5b5   :  { %v610_v34 = vadd.f32 %v609_v15, %v850_v56 }
 0x5b7   :  { %647 = vmatmul.f32.vlgmr.msrb.gmra.mxu3 %v610_v34 }
 0x63a   :  { %v648_v36 = vpop.f32.mrf.mxu3 }
 0x63b   :  { %v649_v37 = vadd.f32 %v674_v35, %v648_v36 }
 0x63d   :  { %651 = vst [vmem:[%s874_s5] sm:$0xff] %v649_v37 }
 0x63e   :  { %656 = vsyncpa [#allocation3], 1 }

</bundles_post_ra>
